<compile_context>
chip_gen: v7x
topology: tpu7x:2x2x1
jax: 0.10.0
libtpu: 0.0.40
codegen_flags: <defaults>
</compile_context>

<pallas_src>
import jax
import jax.numpy as jnp
from jax import lax
from jax.experimental import pallas as pl
from jax.experimental.pallas import tpu as pltpu


# ---------------------------------------------------------------------------
# Fused Pallas kernel: bidirectional masked tanh-RNN + epilogue + fc_rnn
# ---------------------------------------------------------------------------

def _rnn_fc_kernel(x_ref, len_ref, mix_a_ref, mix_b_ref,
                   wih_ref, whh_f_ref, whh_b_ref, b_ref,
                   w_fc_ref, b_fc_ref,
                   out_ref, fcin_ref):
    """Fused TransformersRNN tail.

    x_ref:     [S*B, E]  time-major flattened embeddings (original batch order)
    len_ref:   [B, 1]    int32 sequence lengths (original order)
    mix_*_ref: [B, 2B]   one-hot mixing matrices reproducing the sorted
                         stack+reshape of the final hidden states
    wih_ref:   [E, 2H]   input->hidden weights, fwd|bwd packed on lanes
    whh_*_ref: [H, H]    hidden->hidden weights per direction
    b_ref:     [1, 2H]   packed RNN biases (b_ih + b_hh), fwd|bwd
    w_fc_ref:  [2H, C], b_fc_ref: [1, C]  final Linear
    out_ref:   [B, C]    logits
    fcin_ref:  [B, 2H]   fc_input (second return value of the module)
    """
    B = len_ref.shape[0]
    SB = x_ref.shape[0]
    S = SB // B
    H = whh_f_ref.shape[0]

    # ---- hoisted: input-to-hidden matmul for every timestep & direction,
    #      plus the (single) bias broadcast.
    xw = jnp.dot(x_ref[...], wih_ref[...],
                 preferred_element_type=jnp.float32) + b_ref[...]     # [S*B, 2H]

    whh_f = whh_f_ref[...]
    whh_b = whh_b_ref[...]

    # ---- hoisted: validity mask for all timesteps: valid[b, t] = t < len[b]
    valid = len_ref[...] > lax.broadcasted_iota(jnp.int32, (1, S), 1)  # [B, S]

    h_f = jnp.zeros((B, H), jnp.float32)
    h_b = jnp.zeros((B, H), jnp.float32)
    acc_f = jnp.zeros((B, H), jnp.float32)
    acc_b = jnp.zeros((B, H), jnp.float32)
    zero = jnp.zeros((B, H), jnp.float32)   # hoisted (no per-iter broadcast)

    # ---- fully-unrolled recurrence; fwd and bwd chains interleaved so their
    #      independent MXU/EUP latencies overlap.  Only h @ Whh + tanh + select
    #      remain on the serial critical path.
    for i in range(S):
        tf = i
        tb = S - 1 - i
        pre_f = xw[tf * B:(tf + 1) * B, :H] + jnp.dot(
            h_f, whh_f, preferred_element_type=jnp.float32)
        pre_b = xw[tb * B:(tb + 1) * B, H:] + jnp.dot(
            h_b, whh_b, preferred_element_type=jnp.float32)
        nf = jnp.tanh(pre_f)
        nb = jnp.tanh(pre_b)
        vf = valid[:, tf:tf + 1]
        vb = valid[:, tb:tb + 1]
        h_f = jnp.where(vf, nf, h_f)
        h_b = jnp.where(vb, nb, h_b)
        acc_f = acc_f + jnp.where(vf, nf, zero)
        acc_b = acc_b + jnp.where(vb, nb, zero)

    # ---- fused epilogue.
    # hidden_mean == reshape(stack([h_f, h_b])[:, sorted_idx], [B, 2H]) with the
    # original code's row-major batch/direction mixing, expressed as two tiny
    # one-hot matmuls (mixing matrices built in the wrapper from sorted_idx).
    h_stack = jnp.concatenate([h_f, h_b], axis=0)                      # [2B, H]
    hm_l = jnp.dot(mix_a_ref[...], h_stack,
                   preferred_element_type=jnp.float32)                 # [B, H]
    hm_r = jnp.dot(mix_b_ref[...], h_stack,
                   preferred_element_type=jnp.float32)                 # [B, H]
    hidden_mean = jnp.concatenate([hm_l, hm_r], axis=1)                # [B, 2H]

    # time-sum of valid outputs is already in original batch order -> no desort
    output_sum = jnp.concatenate([acc_f, acc_b], axis=1)               # [B, 2H]

    fc_in = output_sum + hidden_mean          # dropout in eval mode == identity
    fcin_ref[...] = fc_in
    out_ref[...] = jnp.dot(fc_in, w_fc_ref[...],
                           preferred_element_type=jnp.float32) + b_fc_ref[...]


_VMEM = pl.BlockSpec(memory_space=pltpu.MemorySpace.VMEM)


def rnn_fc_pallas(x2d, lengths, mix_a, mix_b,
                  wih_fb, whh_f, whh_b, b_fb, w_fc, b_fc):
    B = lengths.shape[0]
    H = whh_f.shape[0]
    C = w_fc.shape[1]
    out_shape = (jax.ShapeDtypeStruct((B, C), jnp.float32),       # logits
                 jax.ShapeDtypeStruct((B, 2 * H), jnp.float32))   # fc_input
    # TODO(synk): for realistic S/B/E this needs a time-tiled grid (BlockSpec
    #             over the S axis, h carried in VMEM scratch) to fit v7x VMEM;
    #             at the toy sizes here everything is whole-array resident.
    return pl.pallas_call(
        _rnn_fc_kernel,
        out_shape=out_shape,
        in_specs=[_VMEM] * 10,
        out_specs=(_VMEM, _VMEM),
    )(x2d, lengths.reshape(B, 1).astype(jnp.int32), mix_a, mix_b,
      wih_fb, whh_f, whh_b, b_fb, w_fc, b_fc)


# ---------------------------------------------------------------------------
# Full forward (glue in plain JAX)
# ---------------------------------------------------------------------------

def transformers_rnn_forward(input_ids, attention_masks, text_lengths, p):
    del attention_masks  # stand-in transformer ignores the mask (see TODO)
    B, S = input_ids.shape
    E = p["emb_table"].shape[1]
    H = p["whh_f"].shape[0]

    # --- transformer stand-in: deterministic embedding lookup -> [B, S, E]
    bert_sentence = p["emb_table"][input_ids]

    # --- time-major flatten for the kernel: row t*B + b = x[b, t, :]
    x2d = jnp.transpose(bert_sentence, (1, 0, 2)).reshape(S * B, E)

    # --- sort bookkeeping.  Only the hidden-state mixing reshape of the
    #     original code depends on the sorted order; use a STABLE descending
    #     sort (jnp.argsort is stable) so equal lengths keep input order.
    sorted_idx = jnp.argsort(-text_lengths)
    perm = jax.nn.one_hot(sorted_idx, B, dtype=jnp.float32)          # [B, B]
    blk = jnp.zeros((2 * B, 2 * B), jnp.float32)
    blk = blk.at[:B, :B].set(perm).at[B:, B:].set(perm)              # blockdiag
    mix_a = blk[0::2]                                                # [B, 2B]
    mix_b = blk[1::2]                                                # [B, 2B]

    # --- pack RNN weights: fwd|bwd on the output-lane axis
    wih_fb = jnp.concatenate([p["wih_f"], p["wih_b"]], axis=1)       # [E, 2H]
    b_fb = jnp.concatenate([p["b_f"], p["b_b"]], axis=1)             # [1, 2H]

    out, fc_input = rnn_fc_pallas(
        x2d, text_lengths, mix_a, mix_b,
        wih_fb, p["whh_f"], p["whh_b"], b_fb, p["w_fc"], p["b_fc"])
    return out, fc_input


# ---------------------------------------------------------------------------
# Pure-JAX reference of the FULL forward (straight translation of the torch
# flow: sort -> packed RNN -> desort -> sum / reshape-mean -> fc)
# ---------------------------------------------------------------------------

def _ref_forward(input_ids, text_lengths, p):
    B, S = input_ids.shape
    H = p["whh_f"].shape[0]
    x = p["emb_table"][input_ids]                                    # [B, S, E]
    sorted_idx = jnp.argsort(-text_lengths)
    sorted_len = text_lengths[sorted_idx]
    desorted_idx = jnp.argsort(sorted_idx)
    xs = x[sorted_idx]
    hp = lax.Precision.HIGHEST

    def run(wih, whh, b, reverse):
        h = jnp.zeros((B, H), jnp.float32)
        acc = jnp.zeros((B, H), jnp.float32)
        ts = range(S - 1, -1, -1) if reverse else range(S)
        for t in ts:
            x_t = xs[:, t, :]
            hn = jnp.tanh(jnp.dot(x_t, wih, precision=hp)
                          + jnp.dot(h, whh, precision=hp) + b)
            valid = (sorted_len > t)[:, None]
            h = jnp.where(valid, hn, h)
            acc = acc + jnp.where(valid, hn, 0.0)
        return acc, h

    acc_f, h_f = run(p["wih_f"], p["whh_f"], p["b_f"], False)
    acc_b, h_b = run(p["wih_b"], p["whh_b"], p["b_b"], True)
    output_sum = jnp.concatenate([acc_f, acc_b], axis=-1)[desorted_idx]
    hidden = jnp.stack([h_f, h_b], axis=0)                           # sorted
    hidden_mean = jnp.mean(jnp.reshape(hidden, (B, -1, 2 * H)), axis=1)
    fc_input = output_sum + hidden_mean                              # dropout=id
    out = jnp.dot(fc_input, p["w_fc"], precision=hp) + p["b_fc"]
    return out, fc_input


# ---------------------------------------------------------------------------
# Main
# ---------------------------------------------------------------------------

if __name__ == "__main__":
    B, S, E, H, C, VOCAB = 2, 8, 32, 32, 4, 50  # hidden_dim=H, class_num=C

    key = jax.random.PRNGKey(0)
    ks = jax.random.split(key, 12)
    scale = 0.1
    params = {
        "emb_table": jax.random.normal(ks[0], (VOCAB, E), jnp.float32) * scale,
        "wih_f": jax.random.normal(ks[1], (E, H), jnp.float32) * scale,
        "whh_f": jax.random.normal(ks[2], (H, H), jnp.float32) * scale,
        "b_f":   jax.random.normal(ks[3], (1, H), jnp.float32) * scale,
        "wih_b": jax.random.normal(ks[4], (E, H), jnp.float32) * scale,
        "whh_b": jax.random.normal(ks[5], (H, H), jnp.float32) * scale,
        "b_b":   jax.random.normal(ks[6], (1, H), jnp.float32) * scale,
        "w_fc":  jax.random.normal(ks[7], (2 * H, C), jnp.float32) * scale,
        "b_fc":  jax.random.normal(ks[8], (1, C), jnp.float32) * scale,
    }

    input_ids = jax.random.randint(ks[9], (B, S), 0, VOCAB, dtype=jnp.int32)
    text_lengths = jnp.array([5, 8], dtype=jnp.int32)
    attention_masks = (jnp.arange(S)[None, :] < text_lengths[:, None]).astype(jnp.int32)

    out, fc_input = transformers_rnn_forward(input_ids, attention_masks,
                                             text_lengths, params)
    jax.block_until_ready((out, fc_input))
    assert out.shape == (B, C) and fc_input.shape == (B, 2 * H)

    # correctness: fused Pallas kernel vs. straight pure-JAX translation
    ref_out, ref_fc = _ref_forward(input_ids, text_lengths, params)
    assert jnp.allclose(ref_fc, fc_input, rtol=2e-2, atol=2e-2), "fc_input mismatch"
    assert jnp.allclose(ref_out, out, rtol=2e-2, atol=2e-2), "logits mismatch"

    print("KERNEL_OK")
</pallas_src>

<mosaic_0001>
module attributes {stable_mosaic.version = 11 : i64} {
  func.func @_rnn_fc_kernel(%arg0: memref<16x32xf32, #tpu.memory_space<vmem>>, %arg1: memref<2x1xi32, #tpu.memory_space<vmem>>, %arg2: memref<2x4xf32, #tpu.memory_space<vmem>>, %arg3: memref<2x4xf32, #tpu.memory_space<vmem>>, %arg4: memref<32x64xf32, #tpu.memory_space<vmem>>, %arg5: memref<32x32xf32, #tpu.memory_space<vmem>>, %arg6: memref<32x32xf32, #tpu.memory_space<vmem>>, %arg7: memref<1x64xf32, #tpu.memory_space<vmem>>, %arg8: memref<64x4xf32, #tpu.memory_space<vmem>>, %arg9: memref<1x4xf32, #tpu.memory_space<vmem>>, %arg10: memref<2x4xf32, #tpu.memory_space<vmem>>, %arg11: memref<2x64xf32, #tpu.memory_space<vmem>>) attributes {dimension_semantics = [], scalar_prefetch = 0 : i64, scratch_operands = 0 : i64, tpu.core_type = #tpu.core_type<tc>} {
    %c0 = arith.constant 0 : index
    %c0_0 = arith.constant 0 : index
    %0 = vector.load %arg0[%c0, %c0_0] : memref<16x32xf32, #tpu.memory_space<vmem>>, vector<16x32xf32>
    %c0_1 = arith.constant 0 : index
    %c0_2 = arith.constant 0 : index
    %1 = vector.load %arg4[%c0_1, %c0_2] : memref<32x64xf32, #tpu.memory_space<vmem>>, vector<32x64xf32>
    %cst = arith.constant dense<0.000000e+00> : vector<16x64xf32>
    %2 = tpu.matmul %0, %1, %cst {dimension_numbers = #tpu.dot_dimension_numbers<[1], [0], [0], [1], [0, 0, 1, 1], [], []>} : vector<16x32xf32>, vector<32x64xf32>, vector<16x64xf32> -> vector<16x64xf32>
    %c0_3 = arith.constant 0 : index
    %c0_4 = arith.constant 0 : index
    %3 = vector.load %arg7[%c0_3, %c0_4] : memref<1x64xf32, #tpu.memory_space<vmem>>, vector<1x64xf32>
    %4 = vector.broadcast %3 : vector<1x64xf32> to vector<16x64xf32>
    %5 = arith.addf %2, %4 : vector<16x64xf32>
    %c0_5 = arith.constant 0 : index
    %c0_6 = arith.constant 0 : index
    %6 = vector.load %arg5[%c0_5, %c0_6] : memref<32x32xf32, #tpu.memory_space<vmem>>, vector<32x32xf32>
    %c0_7 = arith.constant 0 : index
    %c0_8 = arith.constant 0 : index
    %7 = vector.load %arg6[%c0_7, %c0_8] : memref<32x32xf32, #tpu.memory_space<vmem>>, vector<32x32xf32>
    %c0_9 = arith.constant 0 : index
    %c0_10 = arith.constant 0 : index
    %8 = vector.load %arg1[%c0_9, %c0_10] : memref<2x1xi32, #tpu.memory_space<vmem>>, vector<2x1xi32>
    %9 = tpu.iota {dimensions = array<i32: 1>} : vector<1x8xi32>
    %10 = vector.broadcast %8 : vector<2x1xi32> to vector<2x8xi32>
    %11 = vector.broadcast %9 : vector<1x8xi32> to vector<2x8xi32>
    %12 = arith.cmpi sgt, %10, %11 : vector<2x8xi32>
    %cst_11 = arith.constant 0.000000e+00 : f32
    %13 = vector.broadcast %cst_11 : f32 to vector<2x32xf32>
    %cst_12 = arith.constant 0.000000e+00 : f32
    %14 = vector.broadcast %cst_12 : f32 to vector<2x32xf32>
    %cst_13 = arith.constant 0.000000e+00 : f32
    %15 = vector.broadcast %cst_13 : f32 to vector<2x32xf32>
    %cst_14 = arith.constant 0.000000e+00 : f32
    %16 = vector.broadcast %cst_14 : f32 to vector<2x32xf32>
    %cst_15 = arith.constant 0.000000e+00 : f32
    %17 = vector.broadcast %cst_15 : f32 to vector<2x32xf32>
    %18 = vector.extract_strided_slice %5 {offsets = [0, 0], sizes = [2, 32], strides = [1, 1]} : vector<16x64xf32> to vector<2x32xf32>
    %cst_16 = arith.constant dense<0.000000e+00> : vector<2x32xf32>
    %19 = tpu.matmul %13, %6, %cst_16 {dimension_numbers = #tpu.dot_dimension_numbers<[1], [0], [0], [1], [0, 0, 1, 1], [], []>} : vector<2x32xf32>, vector<32x32xf32>, vector<2x32xf32> -> vector<2x32xf32>
    %20 = arith.addf %18, %19 : vector<2x32xf32>
    %21 = vector.extract_strided_slice %5 {offsets = [14, 32], sizes = [2, 32], strides = [1, 1]} : vector<16x64xf32> to vector<2x32xf32>
    %cst_17 = arith.constant dense<0.000000e+00> : vector<2x32xf32>
    %22 = tpu.matmul %14, %7, %cst_17 {dimension_numbers = #tpu.dot_dimension_numbers<[1], [0], [0], [1], [0, 0, 1, 1], [], []>} : vector<2x32xf32>, vector<32x32xf32>, vector<2x32xf32> -> vector<2x32xf32>
    %23 = arith.addf %21, %22 : vector<2x32xf32>
    %24 = math.tanh %20 : vector<2x32xf32>
    %25 = math.tanh %23 : vector<2x32xf32>
    %26 = vector.extract_strided_slice %12 {offsets = [0, 0], sizes = [2, 1], strides = [1, 1]} : vector<2x8xi1> to vector<2x1xi1>
    %27 = vector.extract_strided_slice %12 {offsets = [0, 7], sizes = [2, 1], strides = [1, 1]} : vector<2x8xi1> to vector<2x1xi1>
    %28 = vector.shape_cast %26 : vector<2x1xi1> to vector<2x1xi1>
    %29 = vector.broadcast %28 : vector<2x1xi1> to vector<2x32xi1>
    %30 = arith.select %29, %24, %13 : vector<2x32xi1>, vector<2x32xf32>
    %31 = vector.shape_cast %27 : vector<2x1xi1> to vector<2x1xi1>
    %32 = vector.broadcast %31 : vector<2x1xi1> to vector<2x32xi1>
    %33 = arith.select %32, %25, %14 : vector<2x32xi1>, vector<2x32xf32>
    %34 = vector.shape_cast %26 : vector<2x1xi1> to vector<2x1xi1>
    %35 = vector.broadcast %34 : vector<2x1xi1> to vector<2x32xi1>
    %36 = arith.select %35, %24, %17 : vector<2x32xi1>, vector<2x32xf32>
    %37 = arith.addf %15, %36 : vector<2x32xf32>
    %38 = vector.shape_cast %27 : vector<2x1xi1> to vector<2x1xi1>
    %39 = vector.broadcast %38 : vector<2x1xi1> to vector<2x32xi1>
    %40 = arith.select %39, %25, %17 : vector<2x32xi1>, vector<2x32xf32>
    %41 = arith.addf %16, %40 : vector<2x32xf32>
    %42 = vector.extract_strided_slice %5 {offsets = [2, 0], sizes = [2, 32], strides = [1, 1]} : vector<16x64xf32> to vector<2x32xf32>
    %cst_18 = arith.constant dense<0.000000e+00> : vector<2x32xf32>
    %43 = tpu.matmul %30, %6, %cst_18 {dimension_numbers = #tpu.dot_dimension_numbers<[1], [0], [0], [1], [0, 0, 1, 1], [], []>} : vector<2x32xf32>, vector<32x32xf32>, vector<2x32xf32> -> vector<2x32xf32>
    %44 = arith.addf %42, %43 : vector<2x32xf32>
    %45 = vector.extract_strided_slice %5 {offsets = [12, 32], sizes = [2, 32], strides = [1, 1]} : vector<16x64xf32> to vector<2x32xf32>
    %cst_19 = arith.constant dense<0.000000e+00> : vector<2x32xf32>
    %46 = tpu.matmul %33, %7, %cst_19 {dimension_numbers = #tpu.dot_dimension_numbers<[1], [0], [0], [1], [0, 0, 1, 1], [], []>} : vector<2x32xf32>, vector<32x32xf32>, vector<2x32xf32> -> vector<2x32xf32>
    %47 = arith.addf %45, %46 : vector<2x32xf32>
    %48 = math.tanh %44 : vector<2x32xf32>
    %49 = math.tanh %47 : vector<2x32xf32>
    %50 = vector.extract_strided_slice %12 {offsets = [0, 1], sizes = [2, 1], strides = [1, 1]} : vector<2x8xi1> to vector<2x1xi1>
    %51 = vector.extract_strided_slice %12 {offsets = [0, 6], sizes = [2, 1], strides = [1, 1]} : vector<2x8xi1> to vector<2x1xi1>
    %52 = vector.shape_cast %50 : vector<2x1xi1> to vector<2x1xi1>
    %53 = vector.broadcast %52 : vector<2x1xi1> to vector<2x32xi1>
    %54 = arith.select %53, %48, %30 : vector<2x32xi1>, vector<2x32xf32>
    %55 = vector.shape_cast %51 : vector<2x1xi1> to vector<2x1xi1>
    %56 = vector.broadcast %55 : vector<2x1xi1> to vector<2x32xi1>
    %57 = arith.select %56, %49, %33 : vector<2x32xi1>, vector<2x32xf32>
    %58 = vector.shape_cast %50 : vector<2x1xi1> to vector<2x1xi1>
    %59 = vector.broadcast %58 : vector<2x1xi1> to vector<2x32xi1>
    %60 = arith.select %59, %48, %17 : vector<2x32xi1>, vector<2x32xf32>
    %61 = arith.addf %37, %60 : vector<2x32xf32>
    %62 = vector.shape_cast %51 : vector<2x1xi1> to vector<2x1xi1>
    %63 = vector.broadcast %62 : vector<2x1xi1> to vector<2x32xi1>
    %64 = arith.select %63, %49, %17 : vector<2x32xi1>, vector<2x32xf32>
    %65 = arith.addf %41, %64 : vector<2x32xf32>
    %66 = vector.extract_strided_slice %5 {offsets = [4, 0], sizes = [2, 32], strides = [1, 1]} : vector<16x64xf32> to vector<2x32xf32>
    %cst_20 = arith.constant dense<0.000000e+00> : vector<2x32xf32>
    %67 = tpu.matmul %54, %6, %cst_20 {dimension_numbers = #tpu.dot_dimension_numbers<[1], [0], [0], [1], [0, 0, 1, 1], [], []>} : vector<2x32xf32>, vector<32x32xf32>, vector<2x32xf32> -> vector<2x32xf32>
    %68 = arith.addf %66, %67 : vector<2x32xf32>
    %69 = vector.extract_strided_slice %5 {offsets = [10, 32], sizes = [2, 32], strides = [1, 1]} : vector<16x64xf32> to vector<2x32xf32>
    %cst_21 = arith.constant dense<0.000000e+00> : vector<2x32xf32>
    %70 = tpu.matmul %57, %7, %cst_21 {dimension_numbers = #tpu.dot_dimension_numbers<[1], [0], [0], [1], [0, 0, 1, 1], [], []>} : vector<2x32xf32>, vector<32x32xf32>, vector<2x32xf32> -> vector<2x32xf32>
    %71 = arith.addf %69, %70 : vector<2x32xf32>
    %72 = math.tanh %68 : vector<2x32xf32>
    %73 = math.tanh %71 : vector<2x32xf32>
    %74 = vector.extract_strided_slice %12 {offsets = [0, 2], sizes = [2, 1], strides = [1, 1]} : vector<2x8xi1> to vector<2x1xi1>
    %75 = vector.extract_strided_slice %12 {offsets = [0, 5], sizes = [2, 1], strides = [1, 1]} : vector<2x8xi1> to vector<2x1xi1>
    %76 = vector.shape_cast %74 : vector<2x1xi1> to vector<2x1xi1>
    %77 = vector.broadcast %76 : vector<2x1xi1> to vector<2x32xi1>
    %78 = arith.select %77, %72, %54 : vector<2x32xi1>, vector<2x32xf32>
    %79 = vector.shape_cast %75 : vector<2x1xi1> to vector<2x1xi1>
    %80 = vector.broadcast %79 : vector<2x1xi1> to vector<2x32xi1>
    %81 = arith.select %80, %73, %57 : vector<2x32xi1>, vector<2x32xf32>
    %82 = vector.shape_cast %74 : vector<2x1xi1> to vector<2x1xi1>
    %83 = vector.broadcast %82 : vector<2x1xi1> to vector<2x32xi1>
    %84 = arith.select %83, %72, %17 : vector<2x32xi1>, vector<2x32xf32>
    %85 = arith.addf %61, %84 : vector<2x32xf32>
    %86 = vector.shape_cast %75 : vector<2x1xi1> to vector<2x1xi1>
    %87 = vector.broadcast %86 : vector<2x1xi1> to vector<2x32xi1>
    %88 = arith.select %87, %73, %17 : vector<2x32xi1>, vector<2x32xf32>
    %89 = arith.addf %65, %88 : vector<2x32xf32>
    %90 = vector.extract_strided_slice %5 {offsets = [6, 0], sizes = [2, 32], strides = [1, 1]} : vector<16x64xf32> to vector<2x32xf32>
    %cst_22 = arith.constant dense<0.000000e+00> : vector<2x32xf32>
    %91 = tpu.matmul %78, %6, %cst_22 {dimension_numbers = #tpu.dot_dimension_numbers<[1], [0], [0], [1], [0, 0, 1, 1], [], []>} : vector<2x32xf32>, vector<32x32xf32>, vector<2x32xf32> -> vector<2x32xf32>
    %92 = arith.addf %90, %91 : vector<2x32xf32>
    %93 = vector.extract_strided_slice %5 {offsets = [8, 32], sizes = [2, 32], strides = [1, 1]} : vector<16x64xf32> to vector<2x32xf32>
    %cst_23 = arith.constant dense<0.000000e+00> : vector<2x32xf32>
    %94 = tpu.matmul %81, %7, %cst_23 {dimension_numbers = #tpu.dot_dimension_numbers<[1], [0], [0], [1], [0, 0, 1, 1], [], []>} : vector<2x32xf32>, vector<32x32xf32>, vector<2x32xf32> -> vector<2x32xf32>
    %95 = arith.addf %93, %94 : vector<2x32xf32>
    %96 = math.tanh %92 : vector<2x32xf32>
    %97 = math.tanh %95 : vector<2x32xf32>
    %98 = vector.extract_strided_slice %12 {offsets = [0, 3], sizes = [2, 1], strides = [1, 1]} : vector<2x8xi1> to vector<2x1xi1>
    %99 = vector.extract_strided_slice %12 {offsets = [0, 4], sizes = [2, 1], strides = [1, 1]} : vector<2x8xi1> to vector<2x1xi1>
    %100 = vector.shape_cast %98 : vector<2x1xi1> to vector<2x1xi1>
    %101 = vector.broadcast %100 : vector<2x1xi1> to vector<2x32xi1>
    %102 = arith.select %101, %96, %78 : vector<2x32xi1>, vector<2x32xf32>
    %103 = vector.shape_cast %99 : vector<2x1xi1> to vector<2x1xi1>
    %104 = vector.broadcast %103 : vector<2x1xi1> to vector<2x32xi1>
    %105 = arith.select %104, %97, %81 : vector<2x32xi1>, vector<2x32xf32>
    %106 = vector.shape_cast %98 : vector<2x1xi1> to vector<2x1xi1>
    %107 = vector.broadcast %106 : vector<2x1xi1> to vector<2x32xi1>
    %108 = arith.select %107, %96, %17 : vector<2x32xi1>, vector<2x32xf32>
    %109 = arith.addf %85, %108 : vector<2x32xf32>
    %110 = vector.shape_cast %99 : vector<2x1xi1> to vector<2x1xi1>
    %111 = vector.broadcast %110 : vector<2x1xi1> to vector<2x32xi1>
    %112 = arith.select %111, %97, %17 : vector<2x32xi1>, vector<2x32xf32>
    %113 = arith.addf %89, %112 : vector<2x32xf32>
    %114 = vector.extract_strided_slice %5 {offsets = [8, 0], sizes = [2, 32], strides = [1, 1]} : vector<16x64xf32> to vector<2x32xf32>
    %cst_24 = arith.constant dense<0.000000e+00> : vector<2x32xf32>
    %115 = tpu.matmul %102, %6, %cst_24 {dimension_numbers = #tpu.dot_dimension_numbers<[1], [0], [0], [1], [0, 0, 1, 1], [], []>} : vector<2x32xf32>, vector<32x32xf32>, vector<2x32xf32> -> vector<2x32xf32>
    %116 = arith.addf %114, %115 : vector<2x32xf32>
    %117 = vector.extract_strided_slice %5 {offsets = [6, 32], sizes = [2, 32], strides = [1, 1]} : vector<16x64xf32> to vector<2x32xf32>
    %cst_25 = arith.constant dense<0.000000e+00> : vector<2x32xf32>
    %118 = tpu.matmul %105, %7, %cst_25 {dimension_numbers = #tpu.dot_dimension_numbers<[1], [0], [0], [1], [0, 0, 1, 1], [], []>} : vector<2x32xf32>, vector<32x32xf32>, vector<2x32xf32> -> vector<2x32xf32>
    %119 = arith.addf %117, %118 : vector<2x32xf32>
    %120 = math.tanh %116 : vector<2x32xf32>
    %121 = math.tanh %119 : vector<2x32xf32>
    %122 = vector.extract_strided_slice %12 {offsets = [0, 4], sizes = [2, 1], strides = [1, 1]} : vector<2x8xi1> to vector<2x1xi1>
    %123 = vector.extract_strided_slice %12 {offsets = [0, 3], sizes = [2, 1], strides = [1, 1]} : vector<2x8xi1> to vector<2x1xi1>
    %124 = vector.shape_cast %122 : vector<2x1xi1> to vector<2x1xi1>
    %125 = vector.broadcast %124 : vector<2x1xi1> to vector<2x32xi1>
    %126 = arith.select %125, %120, %102 : vector<2x32xi1>, vector<2x32xf32>
    %127 = vector.shape_cast %123 : vector<2x1xi1> to vector<2x1xi1>
    %128 = vector.broadcast %127 : vector<2x1xi1> to vector<2x32xi1>
    %129 = arith.select %128, %121, %105 : vector<2x32xi1>, vector<2x32xf32>
    %130 = vector.shape_cast %122 : vector<2x1xi1> to vector<2x1xi1>
    %131 = vector.broadcast %130 : vector<2x1xi1> to vector<2x32xi1>
    %132 = arith.select %131, %120, %17 : vector<2x32xi1>, vector<2x32xf32>
    %133 = arith.addf %109, %132 : vector<2x32xf32>
    %134 = vector.shape_cast %123 : vector<2x1xi1> to vector<2x1xi1>
    %135 = vector.broadcast %134 : vector<2x1xi1> to vector<2x32xi1>
    %136 = arith.select %135, %121, %17 : vector<2x32xi1>, vector<2x32xf32>
    %137 = arith.addf %113, %136 : vector<2x32xf32>
    %138 = vector.extract_strided_slice %5 {offsets = [10, 0], sizes = [2, 32], strides = [1, 1]} : vector<16x64xf32> to vector<2x32xf32>
    %cst_26 = arith.constant dense<0.000000e+00> : vector<2x32xf32>
    %139 = tpu.matmul %126, %6, %cst_26 {dimension_numbers = #tpu.dot_dimension_numbers<[1], [0], [0], [1], [0, 0, 1, 1], [], []>} : vector<2x32xf32>, vector<32x32xf32>, vector<2x32xf32> -> vector<2x32xf32>
    %140 = arith.addf %138, %139 : vector<2x32xf32>
    %141 = vector.extract_strided_slice %5 {offsets = [4, 32], sizes = [2, 32], strides = [1, 1]} : vector<16x64xf32> to vector<2x32xf32>
    %cst_27 = arith.constant dense<0.000000e+00> : vector<2x32xf32>
    %142 = tpu.matmul %129, %7, %cst_27 {dimension_numbers = #tpu.dot_dimension_numbers<[1], [0], [0], [1], [0, 0, 1, 1], [], []>} : vector<2x32xf32>, vector<32x32xf32>, vector<2x32xf32> -> vector<2x32xf32>
    %143 = arith.addf %141, %142 : vector<2x32xf32>
    %144 = math.tanh %140 : vector<2x32xf32>
    %145 = math.tanh %143 : vector<2x32xf32>
    %146 = vector.extract_strided_slice %12 {offsets = [0, 5], sizes = [2, 1], strides = [1, 1]} : vector<2x8xi1> to vector<2x1xi1>
    %147 = vector.extract_strided_slice %12 {offsets = [0, 2], sizes = [2, 1], strides = [1, 1]} : vector<2x8xi1> to vector<2x1xi1>
    %148 = vector.shape_cast %146 : vector<2x1xi1> to vector<2x1xi1>
    %149 = vector.broadcast %148 : vector<2x1xi1> to vector<2x32xi1>
    %150 = arith.select %149, %144, %126 : vector<2x32xi1>, vector<2x32xf32>
    %151 = vector.shape_cast %147 : vector<2x1xi1> to vector<2x1xi1>
    %152 = vector.broadcast %151 : vector<2x1xi1> to vector<2x32xi1>
    %153 = arith.select %152, %145, %129 : vector<2x32xi1>, vector<2x32xf32>
    %154 = vector.shape_cast %146 : vector<2x1xi1> to vector<2x1xi1>
    %155 = vector.broadcast %154 : vector<2x1xi1> to vector<2x32xi1>
    %156 = arith.select %155, %144, %17 : vector<2x32xi1>, vector<2x32xf32>
    %157 = arith.addf %133, %156 : vector<2x32xf32>
    %158 = vector.shape_cast %147 : vector<2x1xi1> to vector<2x1xi1>
    %159 = vector.broadcast %158 : vector<2x1xi1> to vector<2x32xi1>
    %160 = arith.select %159, %145, %17 : vector<2x32xi1>, vector<2x32xf32>
    %161 = arith.addf %137, %160 : vector<2x32xf32>
    %162 = vector.extract_strided_slice %5 {offsets = [12, 0], sizes = [2, 32], strides = [1, 1]} : vector<16x64xf32> to vector<2x32xf32>
    %cst_28 = arith.constant dense<0.000000e+00> : vector<2x32xf32>
    %163 = tpu.matmul %150, %6, %cst_28 {dimension_numbers = #tpu.dot_dimension_numbers<[1], [0], [0], [1], [0, 0, 1, 1], [], []>} : vector<2x32xf32>, vector<32x32xf32>, vector<2x32xf32> -> vector<2x32xf32>
    %164 = arith.addf %162, %163 : vector<2x32xf32>
    %165 = vector.extract_strided_slice %5 {offsets = [2, 32], sizes = [2, 32], strides = [1, 1]} : vector<16x64xf32> to vector<2x32xf32>
    %cst_29 = arith.constant dense<0.000000e+00> : vector<2x32xf32>
    %166 = tpu.matmul %153, %7, %cst_29 {dimension_numbers = #tpu.dot_dimension_numbers<[1], [0], [0], [1], [0, 0, 1, 1], [], []>} : vector<2x32xf32>, vector<32x32xf32>, vector<2x32xf32> -> vector<2x32xf32>
    %167 = arith.addf %165, %166 : vector<2x32xf32>
    %168 = math.tanh %164 : vector<2x32xf32>
    %169 = math.tanh %167 : vector<2x32xf32>
    %170 = vector.extract_strided_slice %12 {offsets = [0, 6], sizes = [2, 1], strides = [1, 1]} : vector<2x8xi1> to vector<2x1xi1>
    %171 = vector.extract_strided_slice %12 {offsets = [0, 1], sizes = [2, 1], strides = [1, 1]} : vector<2x8xi1> to vector<2x1xi1>
    %172 = vector.shape_cast %170 : vector<2x1xi1> to vector<2x1xi1>
    %173 = vector.broadcast %172 : vector<2x1xi1> to vector<2x32xi1>
    %174 = arith.select %173, %168, %150 : vector<2x32xi1>, vector<2x32xf32>
    %175 = vector.shape_cast %171 : vector<2x1xi1> to vector<2x1xi1>
    %176 = vector.broadcast %175 : vector<2x1xi1> to vector<2x32xi1>
    %177 = arith.select %176, %169, %153 : vector<2x32xi1>, vector<2x32xf32>
    %178 = vector.shape_cast %170 : vector<2x1xi1> to vector<2x1xi1>
    %179 = vector.broadcast %178 : vector<2x1xi1> to vector<2x32xi1>
    %180 = arith.select %179, %168, %17 : vector<2x32xi1>, vector<2x32xf32>
    %181 = arith.addf %157, %180 : vector<2x32xf32>
    %182 = vector.shape_cast %171 : vector<2x1xi1> to vector<2x1xi1>
    %183 = vector.broadcast %182 : vector<2x1xi1> to vector<2x32xi1>
    %184 = arith.select %183, %169, %17 : vector<2x32xi1>, vector<2x32xf32>
    %185 = arith.addf %161, %184 : vector<2x32xf32>
    %186 = vector.extract_strided_slice %5 {offsets = [14, 0], sizes = [2, 32], strides = [1, 1]} : vector<16x64xf32> to vector<2x32xf32>
    %cst_30 = arith.constant dense<0.000000e+00> : vector<2x32xf32>
    %187 = tpu.matmul %174, %6, %cst_30 {dimension_numbers = #tpu.dot_dimension_numbers<[1], [0], [0], [1], [0, 0, 1, 1], [], []>} : vector<2x32xf32>, vector<32x32xf32>, vector<2x32xf32> -> vector<2x32xf32>
    %188 = arith.addf %186, %187 : vector<2x32xf32>
    %189 = vector.extract_strided_slice %5 {offsets = [0, 32], sizes = [2, 32], strides = [1, 1]} : vector<16x64xf32> to vector<2x32xf32>
    %cst_31 = arith.constant dense<0.000000e+00> : vector<2x32xf32>
    %190 = tpu.matmul %177, %7, %cst_31 {dimension_numbers = #tpu.dot_dimension_numbers<[1], [0], [0], [1], [0, 0, 1, 1], [], []>} : vector<2x32xf32>, vector<32x32xf32>, vector<2x32xf32> -> vector<2x32xf32>
    %191 = arith.addf %189, %190 : vector<2x32xf32>
    %192 = math.tanh %188 : vector<2x32xf32>
    %193 = math.tanh %191 : vector<2x32xf32>
    %194 = vector.extract_strided_slice %12 {offsets = [0, 7], sizes = [2, 1], strides = [1, 1]} : vector<2x8xi1> to vector<2x1xi1>
    %195 = vector.extract_strided_slice %12 {offsets = [0, 0], sizes = [2, 1], strides = [1, 1]} : vector<2x8xi1> to vector<2x1xi1>
    %196 = vector.shape_cast %194 : vector<2x1xi1> to vector<2x1xi1>
    %197 = vector.broadcast %196 : vector<2x1xi1> to vector<2x32xi1>
    %198 = arith.select %197, %192, %174 : vector<2x32xi1>, vector<2x32xf32>
    %199 = vector.shape_cast %195 : vector<2x1xi1> to vector<2x1xi1>
    %200 = vector.broadcast %199 : vector<2x1xi1> to vector<2x32xi1>
    %201 = arith.select %200, %193, %177 : vector<2x32xi1>, vector<2x32xf32>
    %202 = vector.shape_cast %194 : vector<2x1xi1> to vector<2x1xi1>
    %203 = vector.broadcast %202 : vector<2x1xi1> to vector<2x32xi1>
    %204 = arith.select %203, %192, %17 : vector<2x32xi1>, vector<2x32xf32>
    %205 = arith.addf %181, %204 : vector<2x32xf32>
    %206 = vector.shape_cast %195 : vector<2x1xi1> to vector<2x1xi1>
    %207 = vector.broadcast %206 : vector<2x1xi1> to vector<2x32xi1>
    %208 = arith.select %207, %193, %17 : vector<2x32xi1>, vector<2x32xf32>
    %209 = arith.addf %185, %208 : vector<2x32xf32>
    %210 = tpu.concatenate %198, %201 in 0 : vector<2x32xf32>, vector<2x32xf32> -> vector<4x32xf32>
    %c0_32 = arith.constant 0 : index
    %c0_33 = arith.constant 0 : index
    %211 = vector.load %arg2[%c0_32, %c0_33] : memref<2x4xf32, #tpu.memory_space<vmem>>, vector<2x4xf32>
    %cst_34 = arith.constant dense<0.000000e+00> : vector<2x32xf32>
    %212 = tpu.matmul %211, %210, %cst_34 {dimension_numbers = #tpu.dot_dimension_numbers<[1], [0], [0], [1], [0, 0, 1, 1], [], []>} : vector<2x4xf32>, vector<4x32xf32>, vector<2x32xf32> -> vector<2x32xf32>
    %c0_35 = arith.constant 0 : index
    %c0_36 = arith.constant 0 : index
    %213 = vector.load %arg3[%c0_35, %c0_36] : memref<2x4xf32, #tpu.memory_space<vmem>>, vector<2x4xf32>
    %cst_37 = arith.constant dense<0.000000e+00> : vector<2x32xf32>
    %214 = tpu.matmul %213, %210, %cst_37 {dimension_numbers = #tpu.dot_dimension_numbers<[1], [0], [0], [1], [0, 0, 1, 1], [], []>} : vector<2x4xf32>, vector<4x32xf32>, vector<2x32xf32> -> vector<2x32xf32>
    %215 = tpu.concatenate %212, %214 in 1 : vector<2x32xf32>, vector<2x32xf32> -> vector<2x64xf32>
    %216 = tpu.concatenate %205, %209 in 1 : vector<2x32xf32>, vector<2x32xf32> -> vector<2x64xf32>
    %217 = arith.addf %216, %215 : vector<2x64xf32>
    %c0_38 = arith.constant 0 : index
    %c0_39 = arith.constant 0 : index
    %218 = vector.load %arg11[%c0_38, %c0_39] : memref<2x64xf32, #tpu.memory_space<vmem>>, vector<2x64xf32>
    tpu.vector_store %arg11[%c0_38, %c0_39], %217 {strides = array<i32>} : memref<2x64xf32, #tpu.memory_space<vmem>>, vector<2x64xf32>,
    %c0_40 = arith.constant 0 : index
    %c0_41 = arith.constant 0 : index
    %219 = vector.load %arg8[%c0_40, %c0_41] : memref<64x4xf32, #tpu.memory_space<vmem>>, vector<64x4xf32>
    %cst_42 = arith.constant dense<0.000000e+00> : vector<2x4xf32>
    %220 = tpu.matmul %217, %219, %cst_42 {dimension_numbers = #tpu.dot_dimension_numbers<[1], [0], [0], [1], [0, 0, 1, 1], [], []>} : vector<2x64xf32>, vector<64x4xf32>, vector<2x4xf32> -> vector<2x4xf32>
    %c0_43 = arith.constant 0 : index
    %c0_44 = arith.constant 0 : index
    %221 = vector.load %arg9[%c0_43, %c0_44] : memref<1x4xf32, #tpu.memory_space<vmem>>, vector<1x4xf32>
    %222 = vector.broadcast %221 : vector<1x4xf32> to vector<2x4xf32>
    %223 = arith.addf %220, %222 : vector<2x4xf32>
    %c0_45 = arith.constant 0 : index
    %c0_46 = arith.constant 0 : index
    %224 = vector.load %arg10[%c0_45, %c0_46] : memref<2x4xf32, #tpu.memory_space<vmem>>, vector<2x4xf32>
    tpu.vector_store %arg10[%c0_45, %c0_46], %223 {strides = array<i32>} : memref<2x4xf32, #tpu.memory_space<vmem>>, vector<2x4xf32>,
    return
  }
}

</mosaic_0001>

<bundles_post_ra>
// kernel: tpu_custom_call.1
= control target key start
LH: loop header
LB: loop body
LE: loop exit
PB: predicated region body
PF: predicated region fallthrough
CT: control target
= control target key end

     0   :  { %17 = vsyncpa [#allocation3], 0  ;;  %s2965_s0 = inlined_call_operand.hbm [shape: f32[16,32], index: 0, kind: input, shape index: {}]   ;;  %s2966_s1 = inlined_call_operand.vmem [shape: s32[2,1], index: 1, kind: input, shape index: {}]   ;;  %s2967_s2 = inlined_call_operand.vmem [shape: f32[2,4], index: 2, kind: input, shape index: {}]   ;;  %s2968_s3 = inlined_call_operand.vmem [shape: f32[2,4], index: 3, kind: input, shape index: {}]   ;;  %s2969_s4 = inlined_call_operand.vmem [shape: f32[32,64], index: 4, kind: input, shape index: {}]   ;;  %s2970_s5 = inlined_call_operand.vmem [shape: f32[32,32], index: 5, kind: input, shape index: {}]   ;;  %s2971_s6 = inlined_call_operand.hbm [shape: f32[32,32], index: 6, kind: input, shape index: {}]   ;;  %s2972_s7 = inlined_call_operand.vmem [shape: f32[1,64], index: 7, kind: input, shape index: {}]   ;;  %s2973_s8 = inlined_call_operand.vmem [shape: f32[64,4], index: 8, kind: input, shape index: {}]   ;;  %s2974_s9 = inlined_call_operand.vmem [shape: f32[1,4], index: 9, kind: input, shape index: {}]   ;;  %s2975_s10 = inlined_call_operand.hbm [shape: f32[2,4], index: 10, kind: output, shape index: {0}]   ;;  %s2976_s11 = inlined_call_operand.hbm [shape: f32[2,64], index: 11, kind: output, shape index: {1}]  }
   0x1   :  { %18 = vsyncpa [#allocation6], 0 }
   0x2   :  { %19 = vsyncpa [#allocation4], 0 }
   0x3   :  { %20 = vsyncpa [#allocation9], 0  ;;  %s2479_s17 = smov [#allocation2]   ;;  %s2383_s21 = scalar_lea.hbm %s2965_s0, 256 }
   0x4   :  { %s26_s18 = sshll.u32 %s2479_s17, 4  ;;  %p2384_p0 = scmp.ne.s32.totalorder %s2965_s0, %s2383_s21  ;;  %s27_s18 = int_to_ptr.vmem [resolvable:$true] %s26_s18 }
   0x5   :  { %p2387_p1 = scmp.lt.u32.totalorder %s2383_s21, %s2965_s0 }
   0x7   :  { %p2389_p2 = pnand %p2387_p1, %p2384_p0 }
   0x9   :  { %2392 = shalt.err (!%p2389_p2)
}
   0xa   :  { %s2393_s26 = scalar_lea.vmem %s27_s18, 256  ;;  %p2398_p4 = scmp.lt.s32.totalorder %s27_s18, %s27_s18 }
   0xb   :  { %p2394_p3 = scmp.ne.s32.totalorder %s27_s18, %s2393_s26  ;;  %p2399_p5 = scmp.lt.s32.totalorder %s2393_s26, %s2393_s26 }
   0xd   :  { %p2400_p6 = por %p2399_p5, %p2398_p4 }
   0xf   :  { %p2401_p7 = pnand %p2400_p6, %p2394_p3 }
  0x11   :  { %2404 = shalt.err (!%p2401_p7)
}
  0x12   :  { %s2480_s27 = smov 128   ;;  %s2481_s28 = smov 8  }
  0x13   :  { %32 = dma.hbm_to_vmem [thread:$0]  %s2965_s0, 256, %s27_s18, [#allocation3], %s2480_s27, %s2480_s27, %s2481_s28  }
  0x14   :  { %s2482_s12 = smov [#allocation5]   ;;  %s2405_s16 = scalar_lea.hbm %s2971_s6, 512 }
  0x15   :  { %s48_s13 = sshll.u32 %s2482_s12, 4  ;;  %p2406_p8 = scmp.ne.s32.totalorder %s2971_s6, %s2405_s16  ;;  %s49_s13 = int_to_ptr.vmem [resolvable:$true] %s48_s13 }
  0x16   :  { %p2409_p9 = scmp.lt.u32.totalorder %s2405_s16, %s2971_s6 }
  0x18   :  { %p2411_p10 = pnand %p2409_p9, %p2406_p8 }
  0x1a   :  { %2414 = shalt.err (!%p2411_p10)
}
  0x1b   :  { %s2415_s22 = scalar_lea.vmem %s49_s13, 512  ;;  %p2420_p12 = scmp.lt.s32.totalorder %s49_s13, %s49_s13 }
  0x1c   :  { %p2416_p11 = scmp.ne.s32.totalorder %s49_s13, %s2415_s22  ;;  %p2421_p13 = scmp.lt.s32.totalorder %s2415_s22, %s2415_s22 }
  0x1e   :  { %p2422_p0 = por %p2421_p13, %p2420_p12 }
  0x20   :  { %p2423_p1 = pnand %p2422_p0, %p2416_p11 }
  0x22   :  { %2426 = shalt.err (!%p2423_p1)
}
  0x23   :  { %54 = dma.hbm_to_vmem [thread:$0]  %s2971_s6, 512, %s49_s13, [#allocation6], %s2480_s27, %s2480_s27, %s2481_s28  }
  0x24   :  { %2471 = dma.done.wait [#allocation3], 256  }
  0x25   :  { %2472 = vsyncadd [#allocation3], 4294967040 }
  0x26   :  { %2473 = dma.done.wait [#allocation6], 512  }
  0x27   :  { %2474 = vsyncadd [#allocation6], 4294966784  ;;  %v2483_v0 = vmov 0.0|0.0   ;;  %vm2484_vm0 = vmmov 0   ;;  %v2485_v1 = vmov 0.0   ;;  %v2486_v2 = vmov 0  }
  0x28   :  { %2220 = vmatprep.subr.bf16.mxu0 %v2483_v0  ;;  %2020 = vmatprep.mubr.msk.f32.mxu0 %vm2484_vm0, %v2485_v1  ;;  %v166_v3 = vld [vmem:[#allocation5] sm:$0xff]  ;;  %v167_v4 = vld [vmem:[#allocation5 + $0x8] sm:$0xff]  ;;  %v168_v5 = vld [vmem:[#allocation5 + $0x10] sm:$0xff]  ;;  %vm80_vm1 = vcmask 261120   ;;  %v2487_v24 = vmov 7   ;;  %v171_v25 = vlaneseq  ;;  %s2488_s21 = smov 32  }
  0x29   :  { %2341 = vset.pattern.permute.xlu0 %v2486_v2  ;;  %v2586_v6 = vpack.c.bf16 %v167_v4, %v166_v3  ;;  %v169_v7 = vld [vmem:[#allocation5 + $0x18] sm:$0xff]  ;;  %v69_v8 = vld [vmem:[%s2969_s4] sm:$0xff]  ;;  %v71_v11 = vld [vmem:[%s2969_s4 + $0x10] sm:$0xff]  ;;  %2342 = vset.pattern.permute.xlu1 %v2487_v24  ;;  %v2489_v36 = vmov 6   ;;  %v2491_v50 = vmov 5   ;;  %v2492_v61 = vmov 4  }
  0x2a   :  { %v70_v9 = vld [vmem:[%s2969_s4 + $0x8] sm:$0xff]  ;;  %v72_v12 = vld [vmem:[%s2969_s4 + $0x18] sm:$0xff]  ;;  %v67_v13 = vld [vmem:[#allocation2] sm:$0xff]  ;;  %v2601_v14 = vpack.c.bf16 %v169_v7, %v168_v5  ;;  %v172_v26 = vand.u32 127, %v171_v25  ;;  %v2493_v4 = vmov 1   ;;  %v2494_v5 = vmov 2  }
  0x2b   :  { %v2206_v10 = vpack.c.bf16 %v70_v9, %v69_v8  ;;  %2222 = vmatpush3.bf16.msra.mxu0 %v2586_v6  ;;  %v2210_v15 = vpack.c.bf16 %v72_v12, %v71_v11  ;;  %1998 = vmatprep.mubr.msk.f32.mxu1 %vm80_vm1, %v67_v13  ;;  %v170_v16 = vld [vmem:[%s2966_s1] sm:$0x3]  ;;  %v163_v18 = vld [vmem:[%s2970_s5 + $0x8] sm:$0xff]  ;;  %v164_v21 = vld [vmem:[%s2970_s5 + $0x10] sm:$0xff]  ;;  %v2495_v7 = vmov 3   ;;  %vm1579_vm11 = vcmask 1041408  }
  0x2c   :  { %2223 = vmatprep.subr.bf16.mxu0 %v2483_v0  ;;  %174 = vperm.xlu0 %2341, %v170_v16   ;;  %v162_v17 = vld [vmem:[%s2970_s5] sm:$0xff]  ;;  %v68_v19 = vld [vmem:[#allocation2 + $0x8] sm:$0xff]  ;;  %v165_v22 = vld [vmem:[%s2970_s5 + $0x18] sm:$0xff]  ;;  %vm1586_vm12 = vcmask 1043456   ;;  %vm1582_vm13 = vcmask 31744   ;;  %vm1762_vm14 = vcmask 523264  }
  0x2d   :  { %2207 = vmatprep.subr.bf16.mxu1 %v2206_v10  ;;  %v2616_v20 = vpack.c.bf16 %v163_v18, %v162_v17  ;;  %v2632_v23 = vpack.c.bf16 %v165_v22, %v164_v21  ;;  %v1868_v32 = vld [vmem:[%s2972_s7] ss:$0 sm:$0xff]  ;;  %s2490_s7 = smov 96   ;;  %vm1745_vm15 = vcmask 517120  }
  0x2e   :  { %2209 = vmatpush3.bf16.msra.mxu1 %v2206_v10 }
  0x2f   :  { %2211 = vmatprep.subr.bf16.mxu1 %v2210_v15  ;;  %2225 = vmatpush3.bf16.msra.mxu0 %v2601_v14 }
  0x30   :  { %2232 = vmatprep.subr.bf16.mxu0 %v2483_v0  ;;  %2344 = vset.pattern.permute.xlu0 %v2491_v50 }
  0x32   :  { %2213 = vmatpush3.bf16.msra.mxu1 %v2210_v15  ;;  %2021 = vmatmul.mubr.f32.vlgmr.msra.gmra.mrb[0].mxu0 %v2485_v1 }
  0x33   :  { %2214 = vmatprep.subr.bf16.mxu1 %v2483_v0  ;;  %2234 = vmatpush3.bf16.msra.mxu0 %v2586_v6 }
  0x34   :  { %2042 = vmatprep.mubr.msk.f32.mxu0 %vm2484_vm0, %v2485_v1  ;;  %2235 = vmatprep.subr.bf16.mxu0 %v2483_v0 }
  0x35   :  { %1999 = vmatmul.mubr.msk.f32.vlgmr.msra.gmra.mrb[0].mxu1 %vm80_vm1, %v68_v19 }
  0x36   :  { %2216 = vmatpush3.bf16.msra.mxu1 %v2616_v20  ;;  %2009 = vmatprep.mubr.msk.f32.mxu1 %vm2484_vm0, %v2485_v1 }
  0x37   :  { %2217 = vmatprep.subr.bf16.mxu1 %v2483_v0  ;;  %2237 = vmatpush3.bf16.msra.mxu0 %v2601_v14 }
  0x38   :  { %2244 = vmatprep.subr.bf16.mxu0 %v2483_v0 }
  0x3a   :  { %2219 = vmatpush3.bf16.msra.mxu1 %v2632_v23 }
  0x3b   :  { %2226 = vmatprep.subr.bf16.mxu1 %v2483_v0 }
  0x3d   :  { %2010 = vmatmul.mubr.f32.vlgmr.msra.gmra.mrb[2].mxu1 %v2485_v1 }
  0x3e   :  { %2228 = vmatpush3.bf16.msra.mxu1 %v2616_v20  ;;  %2031 = vmatprep.mubr.msk.f32.mxu1 %vm2484_vm0, %v2485_v1 }
  0x3f   :  { %2229 = vmatprep.subr.bf16.mxu1 %v2483_v0 }
  0x42   :  { %2231 = vmatpush3.bf16.msra.mxu1 %v2632_v23 }
  0x43   :  { %2238 = vmatprep.subr.bf16.mxu1 %v2483_v0 }
  0xab   :  { %v175_v27 = vpop.permute.xlu0 %174 }
  0xac   :  { %vm176_vm2 = vcmp.gt.s32.totalorder %v175_v27, %v172_v26 }
  0xad   :  { %v2649_v28 = vsel %vm176_vm2, 1, %v2486_v2 }
  0xae   :  { %336 = vperm.xlu1 %2342, %v2649_v28  }
  0xb2   :  { %2343 = vset.pattern.permute.xlu1 %v2489_v36 }
 0x105   :  { %v317_v29 = vpop.f32.mrb[0].mxu0 }
 0x106   :  { %v322_v30 = vrot.slane %v317_v29, 2  ;;  %v2022_v31 = vpop.f32.mrb[1].mxu0 }
 0x108   :  { %v2000_v33 = vpop.f32.mrb[0].mxu1  ;;  %323 = vrot.lane.b32.xlu0 %v322_v30, %s2488_s21 }
 0x109   :  { %v153_v34 = vpop.f32.mrb[1].mxu1  ;;  %v2660_v39 = vadd.f32 %v2000_v33, %v1868_v32 }
 0x10a   :  { %v2656_v35 = vadd.f32 %v1868_v32, %v153_v34 }
 0x110   :  { %v2658_v37 = vpop.f32.mrb[2].mxu1 }
 0x111   :  { %v2011_v38 = vpop.f32.mrb[3].mxu1  ;;  %v250_v16 = vadd.f32 %v2658_v37, %v2656_v35 }
 0x12d   :  { %v2666_v44 = vpop.permute.xlu1 %336 }
 0x12e   :  { %vm338_vm3 = vcmp.eq.s32.totalorder %v2666_v44, 1  ;;  %v1660_v44 = vld [vmem:[%s2968_s3] sm:$0x3] }
 0x17a   :  { %v324_v40 = vpop.permute.xlu0 %323 }
 0x17b   :  { %v326_v41 = vadd.f32 %v324_v40, %v2660_v39 }
 0x17d   :  { %2351 = vtanh.f32 %v326_v41 }
 0x187   :  { %v2352_v42 = vpop.eup %2351 }
 0x188   :  { %v340_v43 = vrot.slane %v2352_v42, 6 }
 0x18a   :  { %341 = vrot.lane.b32.xlu1 %v340_v43, %s2490_s7 }
 0x18e   :  { %514 = vperm.xlu1 %2343, %v2649_v28  }
 0x192   :  { %2345 = vset.pattern.permute.xlu1 %v2486_v2 }
 0x1fc   :  { %v342_v45 = vpop.permute.xlu1 %341 }
 0x1fd   :  { %v344_v46 = vsel %vm338_vm3, %v342_v45, 0.0 }
 0x1fe   :  { %2043 = vmatmul.mubr.msk.f32.vlgmr.msra.gmra.mrb[2].mxu0 %vm80_vm1, %v344_v46 }
 0x1ff   :  { %2246 = vmatpush3.bf16.msra.mxu0 %v2586_v6  ;;  %2064 = vmatprep.mubr.msk.f32.mxu0 %vm2484_vm0, %v2485_v1 }
 0x200   :  { %2247 = vmatprep.subr.bf16.mxu0 %v2483_v0 }
 0x203   :  { %2249 = vmatpush3.bf16.msra.mxu0 %v2601_v14 }
 0x204   :  { %2256 = vmatprep.subr.bf16.mxu0 %v2483_v0 }
 0x20d   :  { %v2682_v55 = vpop.permute.xlu1 %514 }
 0x20e   :  { %vm516_vm4 = vcmp.eq.s32.totalorder %v2682_v55, 1 }
 0x2d1   :  { %v493_v47 = vpop.f32.mrb[2].mxu0 }
 0x2d2   :  { %v498_v48 = vrot.slane %v493_v47, 4  ;;  %v2044_v49 = vpop.f32.mrb[3].mxu0 }
 0x2d4   :  { %499 = vrot.lane.b32.xlu0 %v498_v48, %s2488_s21 }
 0x346   :  { %v500_v51 = vpop.permute.xlu0 %499 }
 0x347   :  { %v502_v52 = vadd.f32 %v500_v51, %v2660_v39 }
 0x349   :  { %2353 = vtanh.f32 %v502_v52 }
 0x353   :  { %v2354_v53 = vpop.eup %2353 }
 0x354   :  { %v518_v54 = vrot.slane %v2354_v53, 4 }
 0x356   :  { %519 = vrot.lane.b32.xlu0 %v518_v54, %s2490_s7 }
 0x35a   :  { %694 = vperm.xlu0 %2344, %v2649_v28  }
 0x35e   :  { %2350 = vset.pattern.permute.xlu0 %v2492_v61 }
 0x3c8   :  { %v520_v56 = vpop.permute.xlu0 %519 }
 0x3c9   :  { %v522_v57 = vsel %vm516_vm4, %v520_v56, %v344_v46  ;;  %v525_v8 = vsel %vm516_vm4, %v520_v56, 0.0 }
 0x3ca   :  { %2065 = vmatmul.mubr.msk.f32.vlgmr.msra.gmra.mrb[4].mxu0 %vm80_vm1, %v522_v57  ;;  %v526_v10 = vadd.f32 %v525_v8, %v344_v46 }
 0x3cb   :  { %2258 = vmatpush3.bf16.msra.mxu0 %v2586_v6  ;;  %2086 = vmatprep.mubr.msk.f32.mxu0 %vm2484_vm0, %v2485_v1 }
 0x3cc   :  { %2259 = vmatprep.subr.bf16.mxu0 %v2483_v0 }
 0x3cf   :  { %2261 = vmatpush3.bf16.msra.mxu0 %v2601_v14 }
 0x3d0   :  { %2268 = vmatprep.subr.bf16.mxu0 %v2483_v0 }
 0x3d9   :  { %v2704_v9 = vpop.permute.xlu0 %694 }
 0x3da   :  { %vm696_vm5 = vcmp.eq.s32.totalorder %v2704_v9, 1 }
 0x49d   :  { %v673_v58 = vpop.f32.mrb[4].mxu0 }
 0x49e   :  { %v678_v59 = vrot.slane %v673_v58, 6  ;;  %v2066_v60 = vpop.f32.mrb[5].mxu0 }
 0x4a0   :  { %679 = vrot.lane.b32.xlu1 %v678_v59, %s2488_s21 }
 0x512   :  { %v680_v62 = vpop.permute.xlu1 %679 }
 0x513   :  { %v682_v63 = vadd.f32 %v680_v62, %v2660_v39 }
 0x515   :  { %2355 = vtanh.f32 %v682_v63 }
 0x516   :  { %2357 = vtanh.f32 %v250_v16 }
 0x51f   :  { %v2356_v2 = vpop.eup %2355 }
 0x520   :  { %v698_v3 = vrot.slane %v2356_v2, 2  ;;  %v2358_v18 = vpop.eup %2357 }
 0x522   :  { %699 = vrot.lane.b32.xlu1 %v698_v3, %s2490_s7 }
 0x526   :  { %331 = vperm.xlu1 %2345, %v2649_v28  }
 0x52a   :  { %2346 = vset.pattern.permute.xlu1 %v2492_v61 }
 0x52b   :  { %873 = vperm.xlu1 %2346, %v2649_v28  }
 0x52f   :  { %2347 = vset.pattern.permute.xlu1 %v2493_v4 }
 0x530   :  { %506 = vperm.xlu1 %2347, %v2649_v28  }
 0x534   :  { %2348 = vset.pattern.permute.xlu1 %v2494_v5 }
 0x535   :  { %686 = vperm.xlu1 %2348, %v2649_v28  }
 0x539   :  { %2349 = vset.pattern.permute.xlu1 %v2495_v7 }
 0x53a   :  { %865 = vperm.xlu1 %2349, %v2649_v28  }
 0x594   :  { %v700_v11 = vpop.permute.xlu1 %699 }
 0x595   :  { %v702_v12 = vsel %vm696_vm5, %v700_v11, %v522_v57  ;;  %v705_v13 = vsel %vm696_vm5, %v700_v11, 0.0 }
 0x596   :  { %2087 = vmatmul.mubr.msk.f32.vlgmr.msra.gmra.mrb[6].mxu0 %vm80_vm1, %v702_v12  ;;  %v2712_v15 = vadd.f32 %v705_v13, %v526_v10 }
 0x597   :  { %2270 = vmatpush3.bf16.msra.mxu0 %v2586_v6  ;;  %2108 = vmatprep.mubr.msk.f32.mxu0 %vm2484_vm0, %v2485_v1 }
 0x598   :  { %2271 = vmatprep.subr.bf16.mxu0 %v2483_v0 }
 0x59b   :  { %2273 = vmatpush3.bf16.msra.mxu0 %v2601_v14 }
 0x59c   :  { %2280 = vmatprep.subr.bf16.mxu0 %v2483_v0 }
 0x5a5   :  { %v2722_v17 = vpop.permute.xlu1 %331 }
 0x5a6   :  { %vm333_vm6 = vcmp.eq.s32.totalorder %v2722_v17, 1 }
 0x5a7   :  { %v334_v19 = vsel %vm333_vm6, %v2358_v18, 0.0 }
 0x5a8   :  { %2032 = vmatmul.mubr.msk.f32.vlgmr.msra.gmra.mrb[4].mxu1 %vm80_vm1, %v334_v19 }
 0x5a9   :  { %2240 = vmatpush3.bf16.msra.mxu1 %v2616_v20  ;;  %2053 = vmatprep.mubr.msk.f32.mxu1 %vm2484_vm0, %v2485_v1 }
 0x5aa   :  { %2241 = vmatprep.subr.bf16.mxu1 %v2483_v0  ;;  %v2737_v28 = vpop.permute.xlu1 %873 }
 0x5ab   :  { %vm875_vm8 = vcmp.eq.s32.totalorder %v2737_v28, 1 }
 0x5ad   :  { %2243 = vmatpush3.bf16.msra.mxu1 %v2632_v23 }
 0x5ae   :  { %2250 = vmatprep.subr.bf16.mxu1 %v2483_v0 }
 0x5af   :  { %v2739_v29 = vpop.permute.xlu1 %506 }
 0x5b0   :  { %vm508_vm7 = vcmp.eq.s32.totalorder %v2739_v29, 1  ;;  %v1747_v29 = vld [vmem:[%s2973_s8] sm:$0xff] }
 0x5b4   :  { %v2767_v46 = vpop.permute.xlu1 %686 }
 0x5b5   :  { %vm688_vm9 = vcmp.eq.s32.totalorder %v2767_v46, 1 }
 0x5b9   :  { %v2785_v62 = vpop.permute.xlu1 %865 }
 0x5ba   :  { %vm867_vm10 = vcmp.eq.s32.totalorder %v2785_v62, 1 }
 0x669   :  { %v853_v21 = vpop.f32.mrb[6].mxu0 }
 0x66a   :  { %858 = vrot.lane.b32.xlu0 %v853_v21, %s2488_s21  ;;  %v2088_v22 = vpop.f32.mrb[7].mxu0 }
 0x66e   :  { %876 = vrot.lane.b32.xlu0 %v702_v12, %s2488_s21 }
 0x67b   :  { %v416_v24 = vpop.f32.mrb[4].mxu1 }
 0x67c   :  { %v421_v25 = vrot.slane %v416_v24, 6  ;;  %v2033_v26 = vpop.f32.mrb[5].mxu1 }
 0x67e   :  { %v423_v27 = vadd.f32 %v421_v25, %v2656_v35 }
 0x680   :  { %2359 = vtanh.f32 %v423_v27 }
 0x68a   :  { %v2360_v30 = vpop.eup %2359 }
 0x68b   :  { %v510_v31 = vrot.slane %v2360_v30, 2 }
 0x68d   :  { %v512_v32 = vsel %vm508_vm7, %v510_v31, %v334_v19  ;;  %v523_v47 = vsel %vm508_vm7, %v510_v31, 0.0 }
 0x68e   :  { %2054 = vmatmul.mubr.msk.f32.vlgmr.msra.gmra.mrb[6].mxu1 %vm80_vm1, %v512_v32  ;;  %v524_v50 = vadd.f32 %v523_v47, %v334_v19 }
 0x68f   :  { %2252 = vmatpush3.bf16.msra.mxu1 %v2616_v20  ;;  %2075 = vmatprep.mubr.msk.f32.mxu1 %vm2484_vm0, %v2485_v1 }
 0x690   :  { %2253 = vmatprep.subr.bf16.mxu1 %v2483_v0 }
 0x693   :  { %2255 = vmatpush3.bf16.msra.mxu1 %v2632_v23 }
 0x694   :  { %2262 = vmatprep.subr.bf16.mxu1 %v2483_v0 }
 0x6dc   :  { %v859_v33 = vpop.permute.xlu0 %858 }
 0x6dd   :  { %v861_v34 = vadd.f32 %v859_v33, %v2660_v39 }
 0x6df   :  { %2361 = vtanh.f32 %v861_v34 }
 0x6e0   :  { %v877_v37 = vpop.permute.xlu0 %876 }
 0x6e9   :  { %v2752_v36 = vpop.eup %2361 }
 0x6ea   :  { %v879_v38 = vsel %vm875_vm8, %v2752_v36, %v877_v37 }
 0x6eb   :  { %963 = vrot.lane.b32.xlu0 %v879_v38, %s2490_s7 }
 0x75d   :  { %v964_v40 = vpop.permute.xlu0 %963 }
 0x75e   :  { %2109 = vmatmul.mubr.msk.f32.vlgmr.msra.gmra.mrb[8].mxu0 %vm80_vm1, %v964_v40 }
 0x75f   :  { %2282 = vmatpush3.bf16.msra.mxu0 %v2586_v6  ;;  %2130 = vmatprep.mubr.msk.f32.mxu0 %vm2484_vm0, %v2485_v1 }
 0x760   :  { %2283 = vmatprep.subr.bf16.mxu0 %v2483_v0 }
 0x761   :  { %v596_v41 = vpop.f32.mrb[6].mxu1 }
 0x762   :  { %v601_v42 = vrot.slane %v596_v41, 4  ;;  %v2055_v43 = vpop.f32.mrb[7].mxu1 }
 0x763   :  { %2285 = vmatpush3.bf16.msra.mxu0 %v2601_v14 }
 0x764   :  { %v603_v45 = vadd.f32 %v601_v42, %v2656_v35  ;;  %2292 = vmatprep.subr.bf16.mxu0 %v2483_v0 }
 0x766   :  { %2363 = vtanh.f32 %v603_v45 }
 0x770   :  { %v2364_v48 = vpop.eup %2363 }
 0x771   :  { %v690_v49 = vrot.slane %v2364_v48, 4 }
 0x773   :  { %v703_v51 = vsel %vm688_vm9, %v690_v49, 0.0  ;;  %v692_v52 = vsel %vm688_vm9, %v690_v49, %v512_v32 }
 0x774   :  { %v704_v53 = vadd.f32 %v703_v51, %v524_v50  ;;  %2076 = vmatmul.mubr.msk.f32.vlgmr.msra.gmra.mrb[8].mxu1 %vm80_vm1, %v692_v52 }
 0x775   :  { %2264 = vmatpush3.bf16.msra.mxu1 %v2616_v20  ;;  %2097 = vmatprep.mubr.msk.f32.mxu1 %vm2484_vm0, %v2485_v1 }
 0x776   :  { %2265 = vmatprep.subr.bf16.mxu1 %v2483_v0 }
 0x779   :  { %2267 = vmatpush3.bf16.msra.mxu1 %v2632_v23 }
 0x77a   :  { %2274 = vmatprep.subr.bf16.mxu1 %v2483_v0 }
 0x831   :  { %v1033_v54 = vpop.f32.mrb[8].mxu0 }
 0x832   :  { %v1038_v56 = vrot.slane %v1033_v54, 2  ;;  %v2110_v57 = vpop.f32.mrb[9].mxu0 }
 0x834   :  { %1039 = vrot.lane.b32.xlu0 %v1038_v56, %s2488_s21 }
 0x847   :  { %v776_v58 = vpop.f32.mrb[8].mxu1 }
 0x848   :  { %v781_v59 = vrot.slane %v776_v58, 2  ;;  %v2077_v60 = vpop.f32.mrb[9].mxu1 }
 0x84a   :  { %v783_v61 = vadd.f32 %v781_v59, %v2656_v35 }
 0x84c   :  { %2365 = vtanh.f32 %v783_v61 }
 0x856   :  { %v2366_v63 = vpop.eup %2365 }
 0x857   :  { %v869_v2 = vrot.slane %v2366_v63, 6 }
 0x859   :  { %v880_v3 = vsel %vm867_vm10, %v869_v2, 0.0  ;;  %v871_v4 = vsel %vm867_vm10, %v869_v2, %v692_v52 }
 0x85a   :  { %v881_v5 = vadd.f32 %v880_v3, %v704_v53  ;;  %2098 = vmatmul.mubr.msk.f32.vlgmr.msra.gmra.mrb[10].mxu1 %vm80_vm1, %v871_v4 }
 0x85b   :  { %2276 = vmatpush3.bf16.msra.mxu1 %v2616_v20  ;;  %2119 = vmatprep.mubr.msk.f32.mxu1 %vm2484_vm0, %v2485_v1 }
 0x85c   :  { %2277 = vmatprep.subr.bf16.mxu1 %v2483_v0 }
 0x85f   :  { %2279 = vmatpush3.bf16.msra.mxu1 %v2632_v23 }
 0x860   :  { %2286 = vmatprep.subr.bf16.mxu1 %v2483_v0 }
 0x8a6   :  { %v1040_v7 = vpop.permute.xlu0 %1039 }
 0x8a7   :  { %v1042_v8 = vadd.f32 %v1040_v7, %v2656_v35 }
 0x8a9   :  { %2367 = vtanh.f32 %v1042_v8 }
 0x8b3   :  { %v2368_v10 = vpop.eup %2367 }
 0x8b4   :  { %v1047_v11 = vrot.slane %v2368_v10, 6 }
 0x8b6   :  { %1048 = vrot.lane.b32.xlu0 %v1047_v11, %s2490_s7 }
 0x928   :  { %v2801_v12 = vpop.permute.xlu0 %1048 }
 0x929   :  { %v1052_v13 = vsel %vm867_vm10, %v2801_v12, %v964_v40 }
 0x92a   :  { %2131 = vmatmul.mubr.msk.f32.vlgmr.msra.gmra.mrb[10].mxu0 %vm80_vm1, %v1052_v13 }
 0x92b   :  { %2294 = vmatpush3.bf16.msra.mxu0 %v2586_v6  ;;  %2152 = vmatprep.mubr.msk.f32.mxu0 %vm2484_vm0, %v2485_v1 }
 0x92c   :  { %2295 = vmatprep.subr.bf16.mxu0 %v2483_v0 }
 0x92d   :  { %v957_v16 = vpop.f32.mrb[10].mxu1 }
 0x92e   :  { %v961_v18 = vadd.f32 %v957_v16, %v2660_v39  ;;  %v2099_v19 = vpop.f32.mrb[11].mxu1 }
 0x92f   :  { %2297 = vmatpush3.bf16.msra.mxu0 %v2601_v14 }
 0x930   :  { %2369 = vtanh.f32 %v961_v18  ;;  %2304 = vmatprep.subr.bf16.mxu0 %v2483_v0 }
 0x93a   :  { %v2370_v21 = vpop.eup %2369 }
 0x93b   :  { %v1045_v22 = vsel %vm875_vm8, %v2370_v21, %v871_v4  ;;  %v1053_v24 = vsel %vm875_vm8, %v2370_v21, 0.0 }
 0x93c   :  { %2120 = vmatmul.mubr.msk.f32.vlgmr.msra.gmra.mrb[12].mxu1 %vm80_vm1, %v1045_v22  ;;  %v1054_v25 = vadd.f32 %v1053_v24, %v881_v5 }
 0x93d   :  { %2288 = vmatpush3.bf16.msra.mxu1 %v2616_v20  ;;  %2141 = vmatprep.mubr.msk.f32.mxu1 %vm2484_vm0, %v2485_v1 }
 0x93e   :  { %2289 = vmatprep.subr.bf16.mxu1 %v2483_v0 }
 0x941   :  { %2291 = vmatpush3.bf16.msra.mxu1 %v2632_v23 }
 0x942   :  { %2298 = vmatprep.subr.bf16.mxu1 %v2483_v0 }
 0x9fd   :  { %v1203_v26 = vpop.f32.mrb[10].mxu0 }
 0x9fe   :  { %v1208_v27 = vrot.slane %v1203_v26, 4  ;;  %v2132_v30 = vpop.f32.mrb[11].mxu0 }
 0xa00   :  { %1209 = vrot.lane.b32.xlu1 %v1208_v27, %s2488_s21 }
 0xa0f   :  { %v1126_v31 = vpop.f32.mrb[12].mxu1 }
 0xa10   :  { %v1131_v32 = vrot.slane %v1126_v31, 6  ;;  %v2121_v33 = vpop.f32.mrb[13].mxu1 }
 0xa12   :  { %v1133_v34 = vadd.f32 %v1131_v32, %v2660_v39 }
 0xa14   :  { %2371 = vtanh.f32 %v1133_v34 }
 0xa1e   :  { %v2372_v37 = vpop.eup %2371 }
 0xa1f   :  { %v1216_v38 = vrot.slane %v2372_v37, 2 }
 0xa21   :  { %v1225_v40 = vsel %vm696_vm5, %v1216_v38, 0.0  ;;  %v1218_v41 = vsel %vm696_vm5, %v1216_v38, %v1045_v22  ;;  %v1748_v38 = vld [vmem:[%s2973_s8 + $0x8] sm:$0xff] }
 0xa22   :  { %v1226_v42 = vadd.f32 %v1225_v40, %v1054_v25  ;;  %2142 = vmatmul.mubr.msk.f32.vlgmr.msra.gmra.mrb[14].mxu1 %vm80_vm1, %v1218_v41  ;;  %v2311_v40 = vpack.c.bf16 %v1748_v38, %v1747_v29 }
 0xa23   :  { %2300 = vmatpush3.bf16.msra.mxu1 %v2616_v20  ;;  %2163 = vmatprep.mubr.msk.f32.mxu1 %vm2484_vm0, %v2485_v1 }
 0xa24   :  { %2301 = vmatprep.subr.bf16.mxu1 %v2483_v0 }
 0xa27   :  { %2303 = vmatpush3.bf16.msra.mxu1 %v2632_v23 }
 0xa28   :  { %2177 = vmatprep.subr.mxu1 %v2485_v1 }
 0xa72   :  { %v1210_v43 = vpop.permute.xlu1 %1209 }
 0xa73   :  { %v1212_v45 = vadd.f32 %v1210_v43, %v2656_v35  ;;  %v1751_v43 = vld [vmem:[%s2973_s8 + $0x20] sm:$0xff] }
 0xa75   :  { %2373 = vtanh.f32 %v1212_v45  ;;  %v1752_v45 = vld [vmem:[%s2973_s8 + $0x28] sm:$0xff] }
 0xa7f   :  { %v2374_v9 = vpop.eup %2373 }
 0xa80   :  { %v1220_v47 = vrot.slane %v2374_v9, 4  ;;  %v2317_v9 = vpack.c.bf16 %v1752_v45, %v1751_v43 }
 0xa82   :  { %1221 = vrot.lane.b32.xlu0 %v1220_v47, %s2490_s7  ;;  %v1753_v47 = vld [vmem:[%s2973_s8 + $0x30] sm:$0xff] }
 0xaf4   :  { %v2840_v48 = vpop.permute.xlu0 %1221 }
 0xaf5   :  { %v1224_v20 = vsel %vm688_vm9, %v2840_v48, %v1052_v13  ;;  %v1298_v49 = vpop.f32.mrb[14].mxu1  ;;  %v882_v13 = vsel %vm875_vm8, %v2752_v36, 0.0  ;;  %v1227_v31 = vsel %vm688_vm9, %v2840_v48, 0.0  ;;  %v1754_v48 = vld [vmem:[%s2973_s8 + $0x38] sm:$0xff] }
 0xaf6   :  { %v1303_v50 = vrot.slane %v1298_v49, 4  ;;  %v2143_v51 = vpop.f32.mrb[15].mxu1  ;;  %2153 = vmatmul.mubr.msk.f32.vlgmr.msra.gmra.mrb[12].mxu0 %vm80_vm1, %v1224_v20 }
 0xaf7   :  { %2306 = vmatpush3.bf16.msra.mxu0 %v2586_v6  ;;  %2174 = vmatprep.mubr.msk.f32.mxu0 %vm2484_vm0, %v2485_v1 }
 0xaf8   :  { %v1305_v23 = vadd.f32 %v1303_v50, %v2660_v39  ;;  %2307 = vmatprep.subr.bf16.mxu0 %v2483_v0 }
 0xafa   :  { %2375 = vtanh.f32 %v1305_v23 }
 0xafb   :  { %2309 = vmatpush3.bf16.msra.mxu0 %v2601_v14 }
 0xafc   :  { %2310 = vmatprep.subr.bf16.mxu0 %v2483_v0 }
 0xb04   :  { %v2376_v52 = vpop.eup %2375 }
 0xb05   :  { %v1388_v53 = vrot.slane %v2376_v52, 4 }
 0xb07   :  { %v1397_v54 = vsel %vm516_vm4, %v1388_v53, 0.0  ;;  %v1390_v6 = vsel %vm516_vm4, %v1388_v53, %v1218_v41  ;;  %v1750_v41 = vld [vmem:[%s2973_s8 + $0x18] sm:$0xff] }
 0xb08   :  { %2164 = vmatmul.mubr.msk.f32.vlgmr.msra.gmra.mrb[16].mxu1 %vm80_vm1, %v1390_v6  ;;  %v1398_v56 = vadd.f32 %v1397_v54, %v1226_v42 }
 0xb09   :  { %2179 = vmatprep.mubr.msk.f32.mxu1 %vm2484_vm0, %v2485_v1 }
 0xbc9   :  { %v1375_v57 = vpop.f32.mrb[12].mxu0 }
 0xbca   :  { %v1380_v58 = vrot.slane %v1375_v57, 6  ;;  %v2154_v59 = vpop.f32.mrb[13].mxu0 }
 0xbcc   :  { %1381 = vrot.lane.b32.xlu1 %v1380_v58, %s2488_s21 }
 0xbdb   :  { %v1470_v14 = vpop.f32.mrb[16].mxu1 }
 0xbdc   :  { %v1475_v60 = vrot.slane %v1470_v14, 2  ;;  %v2165_v61 = vpop.f32.mrb[17].mxu1 }
 0xbde   :  { %v1477_v63 = vadd.f32 %v1475_v60, %v2660_v39 }
 0xbe0   :  { %2377 = vtanh.f32 %v1477_v63 }
 0xbea   :  { %v2378_v2 = vpop.eup %2377 }
 0xbeb   :  { %v1559_v55 = vrot.slane %v2378_v2, 6 }
 0xbed   :  { %v1566_v3 = vsel %vm338_vm3, %v1559_v55, 0.0  ;;  %v1561_v17 = vsel %vm338_vm3, %v1559_v55, %v1390_v6 }
 0xbee   :  { %v2864_v4 = vadd.f32 %v1566_v3, %v1398_v56 }
 0xc3e   :  { %v1382_v5 = vpop.permute.xlu1 %1381 }
 0xc3f   :  { %v1384_v7 = vadd.f32 %v1382_v5, %v2656_v35 }
 0xc41   :  { %2379 = vtanh.f32 %v1384_v7 }
 0xc4b   :  { %v2380_v8 = vpop.eup %2379 }
 0xc4c   :  { %v1392_v10 = vrot.slane %v2380_v8, 2 }
 0xc4e   :  { %1393 = vrot.lane.b32.xlu0 %v1392_v10, %s2490_s7 }
 0xcc0   :  { %v1394_v11 = vpop.permute.xlu0 %1393 }
 0xcc1   :  { %v1396_v39 = vsel %vm508_vm7, %v1394_v11, %v1224_v20  ;;  %v1399_v62 = vsel %vm508_vm7, %v1394_v11, 0.0  ;;  %v2320_v20 = vpack.c.bf16 %v1754_v48, %v1753_v47 }
 0xcc2   :  { %1562 = vrot.lane.b32.xlu0 %v1396_v39, %s2488_s21  ;;  %2175 = vmatmul.mubr.msk.f32.vlgmr.msra.gmra.mrb[14].mxu0 %vm80_vm1, %v1396_v39 }
 0xcc3   :  { %2203 = vmatprep.mubr.msk.f32.mxu0 %vm2484_vm0, %v2485_v1  ;;  %2312 = vmatpush3.bf16.msra.mxu0 %v2311_v40 }
 0xcc4   :  { %2313 = vmatprep.subr.bf16.mxu0 %v2483_v0 }
 0xcc6   :  { %884 = vrot.lane.b32.xlu0 %v882_v13, %s2490_s7 }
 0xd34   :  { %v1563_v24 = vpop.permute.xlu0 %1562 }
 0xd38   :  { %v885_v36 = vpop.permute.xlu0 %884 }
 0xd39   :  { %v887_v27 = vadd.f32 %v885_v36, %v2712_v15  ;;  %v1581_v15 = vld [vmem:[%s2967_s2] sm:$0x3] }
 0xd95   :  { %v1547_v16 = vpop.f32.mrb[14].mxu0 }
 0xd96   :  { %1552 = vrot.lane.b32.xlu1 %v1547_v16, %s2488_s21  ;;  %v2176_v18 = vpop.f32.mrb[15].mxu0 }
 0xe08   :  { %v1553_v19 = vpop.permute.xlu1 %1552 }
 0xe09   :  { %v1555_v21 = vadd.f32 %v1553_v19, %v2656_v35  ;;  %v1055_v35 = vsel %vm867_vm10, %v2801_v12, 0.0 }
 0xe0a   :  { %v1056_v30 = vadd.f32 %v1055_v35, %v887_v27 }
 0xe0b   :  { %2381 = vtanh.f32 %v1555_v21 }
 0xe0c   :  { %v1228_v32 = vadd.f32 %v1227_v31, %v1056_v30 }
 0xe0e   :  { %v1400_v46 = vadd.f32 %v1399_v62, %v1228_v32 }
 0xe15   :  { %v2382_v22 = vpop.eup %2381 }
 0xe16   :  { %v1565_v25 = vsel %vm333_vm6, %v2382_v22, %v1563_v24  ;;  %v1568_v28 = vsel %vm333_vm6, %v2382_v22, 0.0 }
 0xe17   :  { %v1575_v26 = vrot.slane %v1565_v25, 6 }
 0xe19   :  { %1576 = vrot.lane.b32.xlu1 %v1575_v26, %s2490_s7 }
 0xe1d   :  { %1570 = vrot.lane.b32.xlu1 %v1568_v28, %s2490_s7 }
 0xe8b   :  { %v1577_v33 = vpop.permute.xlu1 %1576 }
 0xe8c   :  { %v1580_v34 = vsel %vm1579_vm11, %v1561_v17, %v1577_v33 }
 0xe8d   :  { %2178 = vmatpush3.msk.msra.mxu1 %vm1586_vm12, %v1580_v34 }
 0xe8e   :  { %2180 = vmatmul.mubr.msk.f32.vlgmr.msra.gmra.mrb[18].mxu1 %vm1582_vm13, %v1581_v15  ;;  %2182 = vmatprep.subr.mxu1 %v2485_v1 }
 0xe8f   :  { %v1571_v12 = vpop.permute.xlu1 %1570  ;;  %2183 = vmatpush3.msk.msra.mxu1 %vm1586_vm12, %v1580_v34  ;;  %2184 = vmatprep.mubr.msk.f32.mxu1 %vm2484_vm0, %v2485_v1  ;;  %v1749_v1 = vld [vmem:[%s2973_s8 + $0x10] sm:$0xff]  ;;  %s2496_s8 = smov [#allocation8]  }
 0xe90   :  { %v1573_v37 = vadd.f32 %v1571_v12, %v1400_v46  ;;  %v2314_v42 = vpack.c.bf16 %v1750_v41, %v1749_v1  ;;  %s1854_s16 = sshll.u32 %s2496_s8, 4  ;;  %s1855_s16 = int_to_ptr.vmem [resolvable:$true] %s1854_s16 }
 0xe91   :  { %s2427_s17 = scalar_lea.vmem %s1855_s16, 32  ;;  %p2432_p3 = scmp.lt.s32.totalorder %s1855_s16, %s1855_s16 }
 0xe92   :  { %1740 = vrot.lane.b32.xlu1 %v1573_v37, %s2488_s21  ;;  %2185 = vmatmul.mubr.msk.f32.vlgmr.msra.gmra.mrb[20].mxu1 %vm1582_vm13, %v1660_v44  ;;  %p2428_p2 = scmp.ne.s32.totalorder %s1855_s16, %s2427_s17  ;;  %p2433_p4 = scmp.lt.s32.totalorder %s2427_s17, %s2427_s17 }
 0xe93   :  { %2315 = vmatpush3.bf16.msra.mxu0 %v2314_v42 }
 0xe94   :  { %2316 = vmatprep.subr.bf16.mxu0 %v2483_v0  ;;  %p2434_p5 = por %p2433_p4, %p2432_p3 }
 0xe96   :  { %p2435_p6 = pnand %p2434_p5, %p2428_p2 }
 0xe97   :  { %2318 = vmatpush3.bf16.msra.mxu0 %v2317_v9 }
 0xe98   :  { %2319 = vmatprep.subr.bf16.mxu0 %v2483_v0 }
 0xe9b   :  { %2321 = vmatpush3.bf16.msra.mxu0 %v2320_v20 }
 0xf04   :  { %v1741_v52 = vpop.permute.xlu1 %1740 }
 0xf05   :  { %v1743_v0 = vsel %vm80_vm1, %v2864_v4, %v1741_v52 }
 0xf61   :  { %v1656_v49 = vpop.f32.mrb[18].mxu1 }
 0xf62   :  { %v2181_v50 = vpop.f32.mrb[19].mxu1 }
 0xf65   :  { %v1730_v51 = vpop.f32.mrb[20].mxu1 }
 0xf66   :  { %1735 = vrot.lane.b32.xlu0 %v1730_v51, %s2488_s21  ;;  %v2186_v23 = vpop.f32.mrb[21].mxu1 }
 0xfd8   :  { %v1736_v53 = vpop.permute.xlu0 %1735 }
 0xfd9   :  { %v1738_v54 = vsel %vm80_vm1, %v1656_v49, %v1736_v53 }
 0xfda   :  { %v1744_v6 = vadd.f32 %v1743_v0, %v1738_v54 }
 0xfdc   :  { %2204 = vmatmul.mubr.msk.f32.vlgmr.msra.gmra.mrb[16].mxu0 %vm1762_vm14, %v1744_v6  ;;  %1746 = vst.msk [vmem:[#allocation8] sm:$0x3] %vm1745_vm15, %v1744_v6 }
 0xfdd   :  { %2438 = shalt.err (!%p2435_p6)
}
 0xfde   :  { %s2439_s20 = scalar_lea.hbm %s2976_s11, 32 }
 0xfdf   :  { %p2440_p7 = scmp.ne.s32.totalorder %s2976_s11, %s2439_s20  ;;  %p2443_p8 = scmp.lt.u32.totalorder %s2439_s20, %s2976_s11 }
 0xfe1   :  { %p2445_p9 = pnand %p2443_p8, %p2440_p7 }
 0xfe3   :  { %2448 = shalt.err (!%p2445_p9)
}
 0xfe4   :  { %1857 = dma.vmem_to_hbm [thread:$0]  %s1855_s16, 32, %s2976_s11, [#allocation9]   ;;  %v1889_v56 = vld [vmem:[%s2974_s9] ss:$0 sm:$0xff]  ;;  %vm1836_vm0 = vcmask 25600  }
 0xfe5   :  { %s2497_s24 = smov [#allocation7]  }
 0xfe6   :  { %s1844_s25 = sshll.u32 %s2497_s24, 4  ;;  %s1845_s25 = int_to_ptr.vmem [resolvable:$true] %s1844_s25 }
 0xfe7   :  { %s2449_s26 = scalar_lea.vmem %s1845_s25, 32  ;;  %p2454_p11 = scmp.lt.s32.totalorder %s1845_s25, %s1845_s25 }
 0xfe8   :  { %p2450_p10 = scmp.ne.s32.totalorder %s1845_s25, %s2449_s26  ;;  %p2455_p12 = scmp.lt.s32.totalorder %s2449_s26, %s2449_s26 }
 0xfea   :  { %p2456_p13 = por %p2455_p12, %p2454_p11 }
 0xfec   :  { %p2457_p0 = pnand %p2456_p13, %p2450_p10 }
0x10af   :  { %v1832_v57 = vpop.f32.mrb[16].mxu0 }
0x10b0   :  { %v1833_v58 = vadd.f32 %v1889_v56, %v1832_v57  ;;  %v2205_v59 = vpop.f32.mrb[17].mxu0 }
0x10b2   :  { %1837 = vst.msk [vmem:[#allocation7] sm:$0x3] %vm1836_vm0, %v1833_v58 }
0x10b3   :  { %2460 = shalt.err (!%p2457_p0)
}
0x10b4   :  { %s2461_s28 = scalar_lea.hbm %s2975_s10, 32 }
0x10b5   :  { %p2462_p1 = scmp.ne.s32.totalorder %s2975_s10, %s2461_s28  ;;  %p2465_p2 = scmp.lt.u32.totalorder %s2461_s28, %s2975_s10 }
0x10b7   :  { %p2467_p3 = pnand %p2465_p2, %p2462_p1 }
0x10b9   :  { %2470 = shalt.err (!%p2467_p3)
}
0x10ba   :  { %1847 = dma.vmem_to_hbm [thread:$0]  %s1845_s25, 32, %s2975_s10, [#allocation4]  }
0x10bb   :  { %2475 = dma.done.wait [#allocation4], 32  }
0x10bc   :  { %2476 = vsyncadd [#allocation4], 4294967264 }
0x10bd   :  { %2477 = dma.done.wait [#allocation9], 32  }
0x10be   :  { %2478 = vsyncadd [#allocation9], 4294967264 }
0x10bf   :  { %1864 = vsyncpa [#allocation3], 1 }
0x10c0   :  { %1865 = vsyncpa [#allocation6], 1 }
0x10c1   :  { %1866 = vsyncpa [#allocation4], 1 }
0x10c2   :  { %1867 = vsyncpa [#allocation9], 1 }

</bundles_post_ra>
